<compile_context>
chip_gen: v7x
topology: tpu7x:2x2x1
jax: 0.10.0
libtpu: 0.0.40
codegen_flags: <defaults>
</compile_context>

<pallas_src>
import jax
import jax.numpy as jnp
from jax import lax
from jax.experimental import pallas as pl
from jax.experimental.pallas import tpu as pltpu

# ----- small synthetic config (BERT-like) -----
SEQ = 8          # tokenized sequence length (<= 1024 in the original)
HIDDEN = 32      # hidden_size
NUM_HEADS = 4
HEAD_DIM = HIDDEN // NUM_HEADS
FFN = 64         # intermediate size
NUM_LAYERS = 2
NUM_CLASSES = 10
VOCAB = 30       # ProtBERT vocab is tiny (amino acids + specials)
LN_EPS = 1e-12   # BERT layer-norm eps


def _layer_norm(x, g, b):
    mu = jnp.mean(x, axis=-1, keepdims=True)
    var = jnp.mean((x - mu) * (x - mu), axis=-1, keepdims=True)
    return (x - mu) * lax.rsqrt(var + LN_EPS) * g + b


def _gelu(x):
    # tanh-approx GELU (EUP-friendly); see TODO at top.
    c = 0.7978845608028654  # sqrt(2/pi)
    return 0.5 * x * (1.0 + jnp.tanh(c * (x + 0.044715 * x * x * x)))


# ---------------------------------------------------------------------------
# Fused Pallas kernel: grid=(NUM_LAYERS,), one encoder layer per grid step,
# classifier head folded into the last step.  Activation lives in VMEM scratch.
# ---------------------------------------------------------------------------
def fused_encoder_classifier_kernel(
        x0_ref,        # [S, H]               embedded input (constant over grid)
        wqkv_ref,      # [3*NH, H, HD]        this layer's packed QKV weights
        bqkv_ref,      # [3*NH, 1, HD]        this layer's packed QKV biases
        wo_ref,        # [NH, HD, H]          attention output projection (head-major)
        w1_ref,        # [H, FFN]             FFN up-projection
        w2_ref,        # [FFN, H]             FFN down-projection
        small_ref,     # [8, 128]             packed {bo, ln1g, ln1b, b1, b2, ln2g, ln2b}
        clswb_ref,     # [H+8, 128]           classifier W (rows 0:H) + bias (row H), lane-padded
        out_ref,       # [8, 128]             lane-dense output tile (row 0 = log-probs)
        x_scr):        # VMEM scratch [S, H]  resident activation
    l = pl.program_id(0)

    @pl.when(l == 0)
    def _():
        x_scr[...] = x0_ref[...].astype(jnp.float32)

    x = x_scr[...]                                            # [S, H]

    # ---- unpack the small per-layer parameter tile ----
    sp = small_ref[...]                                       # (8, 128)
    bo = sp[0:1, 0:HIDDEN]
    ln1g = sp[1:2, 0:HIDDEN]
    ln1b = sp[2:3, 0:HIDDEN]
    b1 = sp[3:4, 0:FFN]
    b2 = sp[4:5, 0:HIDDEN]
    ln2g = sp[5:6, 0:HIDDEN]
    ln2b = sp[6:7, 0:HIDDEN]

    # ---- fused Q/K/V projection: one head-batched dot_general ----
    G = 3 * NUM_HEADS
    xb = jnp.broadcast_to(x[None, :, :], (G, SEQ, HIDDEN))    # [3*NH, S, H]
    qkv = lax.dot_general(
        xb, wqkv_ref[...], (((2,), (1,)), ((0,), (0,))),
        preferred_element_type=jnp.float32) + bqkv_ref[...]   # [3*NH, S, HD]
    qh = qkv[0:NUM_HEADS]                                     # [NH, S, HD]
    kh = qkv[NUM_HEADS:2 * NUM_HEADS]
    vh = qkv[2 * NUM_HEADS:3 * NUM_HEADS]

    # ---- scaled dot-product attention, batched over heads ----
    scale = 1.0 / (HEAD_DIM ** 0.5)
    s = lax.dot_general(qh, kh, (((2,), (2,)), ((0,), (0,))),
                        preferred_element_type=jnp.float32) * scale       # [NH, S, S]
    s = s - jnp.max(s, axis=-1, keepdims=True)
    p = jnp.exp(s)
    p = p * pl.reciprocal(jnp.sum(p, axis=-1, keepdims=True), approx=True)
    ctx = lax.dot_general(p, vh, (((2,), (1,)), ((0,), (0,))),
                          preferred_element_type=jnp.float32)             # [NH, S, HD]

    # ---- output projection (batched per head, summed over heads) + LN ----
    attn = jnp.sum(
        lax.dot_general(ctx, wo_ref[...], (((2,), (1,)), ((0,), (0,))),
                        preferred_element_type=jnp.float32), axis=0) + bo  # [S, H]
    h1 = _layer_norm(x + attn, ln1g, ln1b)

    # ---- FFN + residual + LN ----
    ff = _gelu(jnp.dot(h1, w1_ref[...], preferred_element_type=jnp.float32) + b1)
    ff2 = jnp.dot(ff, w2_ref[...], preferred_element_type=jnp.float32) + b2
    x_new = _layer_norm(h1 + ff2, ln2g, ln2b)
    x_scr[...] = x_new

    # ---- classifier head fused into the last grid step ----
    @pl.when(l == NUM_LAYERS - 1)
    def _():
        cls = x_new[0:1, :]                                   # CLS token: last_hidden_state[0][0]
        # dropout: eval-mode identity (see TODO at top)
        w = clswb_ref[0:HIDDEN, :]                            # (H, 128), zero-padded classes
        b = clswb_ref[HIDDEN:HIDDEN + 1, :]                   # (1, 128), -1e9 on padded classes
        logits = jnp.dot(cls, w, preferred_element_type=jnp.float32) + b  # (1, 128)
        m = jnp.max(logits, axis=-1, keepdims=True)
        z = logits - m
        lse = jnp.log(jnp.sum(jnp.exp(z), axis=-1, keepdims=True))
        out_ref[...] = jnp.broadcast_to(z - lse, (8, 128)).astype(out_ref.dtype)


def substrate_classifier_forward(input_ids, params):
    # input_ids: int32 [1, SEQ] (tokenizer output stand-in; batch=1 as in the module)
    ids = input_ids[0]                                        # [SEQ]
    x = params["tok_emb"][ids] + params["pos_emb"] + params["type_emb"][0]
    x = _layer_norm(x, params["emb_ln_g"], params["emb_ln_b"])  # embedding LN (tiny glue)

    out_padded = pl.pallas_call(
        fused_encoder_classifier_kernel,
        out_shape=jax.ShapeDtypeStruct((8, 128), jnp.float32),
        grid_spec=pltpu.PrefetchScalarGridSpec(
            num_scalar_prefetch=0,
            grid=(NUM_LAYERS,),
            in_specs=[
                pl.BlockSpec((SEQ, HIDDEN), lambda l: (0, 0)),                            # x0
                pl.BlockSpec((None, 3 * NUM_HEADS, HIDDEN, HEAD_DIM),
                             lambda l: (l, 0, 0, 0)),                                     # wqkv_h
                pl.BlockSpec((None, 3 * NUM_HEADS, 1, HEAD_DIM),
                             lambda l: (l, 0, 0, 0)),                                     # bqkv_h
                pl.BlockSpec((None, NUM_HEADS, HEAD_DIM, HIDDEN),
                             lambda l: (l, 0, 0, 0)),                                     # wo_h
                pl.BlockSpec((None, HIDDEN, FFN), lambda l: (l, 0, 0)),                   # w1
                pl.BlockSpec((None, FFN, HIDDEN), lambda l: (l, 0, 0)),                   # w2
                pl.BlockSpec((None, 8, 128), lambda l: (l, 0, 0)),                        # small pack
                pl.BlockSpec((HIDDEN + 8, 128), lambda l: (0, 0)),                        # cls W+b
            ],
            out_specs=pl.BlockSpec((8, 128), lambda l: (0, 0)),
            scratch_shapes=[pltpu.VMEM((SEQ, HIDDEN), jnp.float32)],
        ),
        compiler_params=pltpu.CompilerParams(dimension_semantics=("arbitrary",)),
    )(x, params["wqkv_h"], params["bqkv_h"], params["wo_h"],
      params["w1"], params["w2"], params["small"], params["cls_wb"])

    return out_padded[0:1, 0:NUM_CLASSES]                     # (1, NUM_CLASSES) log_softmax


# ---------------------------------------------------------------------------
# Deterministic parameter construction (synthetic; BERT-like init, std=0.02).
# Per-layer weights are packed/stacked once here so the kernel never reshapes.
# ---------------------------------------------------------------------------
def make_params(key):
    def nrm(k, shape, std=0.02):
        return std * jax.random.normal(k, shape, dtype=jnp.float32)

    def to_heads(w):   # (H, H) -> (NH, H, HD) with head h taking columns h*HD:(h+1)*HD
        return w.reshape(HIDDEN, NUM_HEADS, HEAD_DIM).transpose(1, 0, 2)

    def row128(v):     # (n,) -> (1, 128) zero-padded
        return jnp.zeros((1, 128), jnp.float32).at[0, :v.shape[0]].set(v)

    keys = iter(jax.random.split(key, 4 + NUM_LAYERS * 6))

    tok_emb = nrm(next(keys), (VOCAB, HIDDEN))
    pos_emb = nrm(next(keys), (SEQ, HIDDEN))
    type_emb = nrm(next(keys), (2, HIDDEN))
    cls_w = nrm(next(keys), (HIDDEN, NUM_CLASSES))   # nn.Linear weight stored transposed
    cls_b = jnp.zeros((NUM_CLASSES,), jnp.float32)

    raw_layers = []
    wqkv_h, bqkv_h, wo_h, w1s, w2s, smalls = [], [], [], [], [], []
    for _ in range(NUM_LAYERS):
        wq = nrm(next(keys), (HIDDEN, HIDDEN)); bq = jnp.zeros((HIDDEN,), jnp.float32)
        wk = nrm(next(keys), (HIDDEN, HIDDEN)); bk = jnp.zeros((HIDDEN,), jnp.float32)
        wv = nrm(next(keys), (HIDDEN, HIDDEN)); bv = jnp.zeros((HIDDEN,), jnp.float32)
        wo = nrm(next(keys), (HIDDEN, HIDDEN)); bo = jnp.zeros((HIDDEN,), jnp.float32)
        w1 = nrm(next(keys), (HIDDEN, FFN));    b1 = jnp.zeros((FFN,), jnp.float32)
        w2 = nrm(next(keys), (FFN, HIDDEN));    b2 = jnp.zeros((HIDDEN,), jnp.float32)
        ln1g = jnp.ones((HIDDEN,), jnp.float32); ln1b = jnp.zeros((HIDDEN,), jnp.float32)
        ln2g = jnp.ones((HIDDEN,), jnp.float32); ln2b = jnp.zeros((HIDDEN,), jnp.float32)

        raw_layers.append(dict(wq=wq, bq=bq, wk=wk, bk=bk, wv=wv, bv=bv, wo=wo, bo=bo,
                               w1=w1, b1=b1, w2=w2, b2=b2,
                               ln1g=ln1g, ln1b=ln1b, ln2g=ln2g, ln2b=ln2b))

        wqkv_h.append(jnp.concatenate([to_heads(wq), to_heads(wk), to_heads(wv)], axis=0))
        bqkv_h.append(jnp.concatenate([bq.reshape(NUM_HEADS, 1, HEAD_DIM),
                                       bk.reshape(NUM_HEADS, 1, HEAD_DIM),
                                       bv.reshape(NUM_HEADS, 1, HEAD_DIM)], axis=0))
        wo_h.append(wo.reshape(NUM_HEADS, HEAD_DIM, HIDDEN))
        w1s.append(w1)
        w2s.append(w2)
        smalls.append(jnp.concatenate(
            [row128(bo), row128(ln1g), row128(ln1b), row128(b1),
             row128(b2), row128(ln2g), row128(ln2b),
             jnp.zeros((1, 128), jnp.float32)], axis=0))       # (8, 128)

    # classifier W+b packed into one lane-padded tile; padded class lanes get a
    # -1e9 bias so they vanish in softmax and can be sliced away in the wrapper.
    cls_w_pad = jnp.zeros((HIDDEN, 128), jnp.float32).at[:, :NUM_CLASSES].set(cls_w)
    cls_b_pad = jnp.full((1, 128), -1e9, jnp.float32).at[0, :NUM_CLASSES].set(cls_b)
    cls_wb = jnp.concatenate([cls_w_pad, cls_b_pad, jnp.zeros((7, 128), jnp.float32)], axis=0)

    return {
        "tok_emb": tok_emb, "pos_emb": pos_emb, "type_emb": type_emb,
        "emb_ln_g": jnp.ones((HIDDEN,), jnp.float32),
        "emb_ln_b": jnp.zeros((HIDDEN,), jnp.float32),
        "cls_w": cls_w, "cls_b": cls_b, "cls_wb": cls_wb,
        "wqkv_h": jnp.stack(wqkv_h), "bqkv_h": jnp.stack(bqkv_h),
        "wo_h": jnp.stack(wo_h), "w1": jnp.stack(w1s), "w2": jnp.stack(w2s),
        "small": jnp.stack(smalls),
        "raw_layers": raw_layers,
    }


# ---------------------------------------------------------------------------
# Pure-JAX reference (same synthetic model, exact division) for validation.
# ---------------------------------------------------------------------------
def reference_forward(input_ids, params):
    ids = input_ids[0]
    x = params["tok_emb"][ids] + params["pos_emb"] + params["type_emb"][0]
    x = _layer_norm(x, params["emb_ln_g"], params["emb_ln_b"])
    scale = 1.0 / (HEAD_DIM ** 0.5)
    for lp in params["raw_layers"]:
        q = x @ lp["wq"] + lp["bq"]
        k = x @ lp["wk"] + lp["bk"]
        v = x @ lp["wv"] + lp["bv"]
        parts = []
        for h in range(NUM_HEADS):
            lo, hi = h * HEAD_DIM, (h + 1) * HEAD_DIM
            s = (q[:, lo:hi] @ k[:, lo:hi].T) * scale
            parts.append(jax.nn.softmax(s, axis=-1) @ v[:, lo:hi])
        ctx = jnp.concatenate(parts, axis=-1)
        h1 = _layer_norm(x + ctx @ lp["wo"] + lp["bo"], lp["ln1g"], lp["ln1b"])
        ff = _gelu(h1 @ lp["w1"] + lp["b1"])
        x = _layer_norm(h1 + ff @ lp["w2"] + lp["b2"], lp["ln2g"], lp["ln2b"])
    logits = x[0:1, :] @ params["cls_w"] + params["cls_b"]
    return jax.nn.log_softmax(logits, axis=-1)


if __name__ == "__main__":
    key = jax.random.PRNGKey(0)
    k_ids, k_params = jax.random.split(key)

    input_ids = jax.random.randint(k_ids, (1, SEQ), 0, VOCAB, dtype=jnp.int32)
    params = make_params(k_params)

    fwd = jax.jit(substrate_classifier_forward)
    out = jax.block_until_ready(fwd(input_ids, params))
    ref = jax.block_until_ready(reference_forward(input_ids, params))

    assert out.shape == (1, NUM_CLASSES)
    # log_softmax rows must sum to ~1 in prob space
    assert jnp.allclose(jnp.sum(jnp.exp(out), axis=1), 1.0, atol=1e-4)
    # matches the pure-JAX reference (loose tol: approx reciprocal in attn softmax)
    assert jnp.allclose(out, ref, atol=2e-2), (
        "max |diff| = %g" % float(jnp.max(jnp.abs(out - ref))))
    print("KERNEL_OK")
</pallas_src>

<mosaic_0001>
module attributes {stable_mosaic.version = 11 : i64} {
  func.func @fused_encoder_classifier_kernel(%arg0: i32, %arg1: memref<8x32xf32, #tpu.memory_space<vmem>>, %arg2: memref<1x12x32x8xf32, #tpu.memory_space<vmem>>, %arg3: memref<1x12x1x8xf32, #tpu.memory_space<vmem>>, %arg4: memref<1x4x8x32xf32, #tpu.memory_space<vmem>>, %arg5: memref<1x32x64xf32, #tpu.memory_space<vmem>>, %arg6: memref<1x64x32xf32, #tpu.memory_space<vmem>>, %arg7: memref<1x8x128xf32, #tpu.memory_space<vmem>>, %arg8: memref<40x128xf32, #tpu.memory_space<vmem>>, %arg9: memref<8x128xf32, #tpu.memory_space<vmem>>, %arg10: memref<8x32xf32, #tpu.memory_space<vmem>>) attributes {dimension_semantics = [#tpu.dimension_semantics<arbitrary>], iteration_bounds = array<i64: 2>, scalar_prefetch = 0 : i64, scratch_operands = 1 : i64, tpu.core_type = #tpu.core_type<tc>, window_params = [{pipeline_mode = #tpu.pipeline_mode<synchronous>, transform_indices = @transform_0, window_bounds = array<i64: 8, 32>}, {transform_indices = @transform_1, window_bounds = array<i64: 1, 12, 32, 8>}, {transform_indices = @transform_2, window_bounds = array<i64: 1, 12, 1, 8>}, {transform_indices = @transform_3, window_bounds = array<i64: 1, 4, 8, 32>}, {transform_indices = @transform_4, window_bounds = array<i64: 1, 32, 64>}, {transform_indices = @transform_5, window_bounds = array<i64: 1, 64, 32>}, {transform_indices = @transform_6, window_bounds = array<i64: 1, 8, 128>}, {pipeline_mode = #tpu.pipeline_mode<synchronous>, transform_indices = @transform_7, window_bounds = array<i64: 40, 128>}, {pipeline_mode = #tpu.pipeline_mode<synchronous>, transform_indices = @transform_8, window_bounds = array<i64: 8, 128>}]} {
    %c0_i32 = arith.constant 0 : i32
    %0 = arith.cmpi eq, %arg0, %c0_i32 : i32
    %1 = arith.extui %0 : i1 to i32
    %c0_i32_0 = arith.constant 0 : i32
    %2 = arith.cmpi ne, %1, %c0_i32_0 : i32
    scf.if %2 {
      %c0_49 = arith.constant 0 : index
      %c0_50 = arith.constant 0 : index
      %123 = vector.load %arg1[%c0_49, %c0_50] : memref<8x32xf32, #tpu.memory_space<vmem>>, vector<8x32xf32>
      %c0_51 = arith.constant 0 : index
      %c0_52 = arith.constant 0 : index
      %124 = vector.load %arg10[%c0_51, %c0_52] : memref<8x32xf32, #tpu.memory_space<vmem>>, vector<8x32xf32>
      tpu.vector_store %arg10[%c0_51, %c0_52], %123 {strides = array<i32>} : memref<8x32xf32, #tpu.memory_space<vmem>>, vector<8x32xf32>,
    } else {
    }
    %c0 = arith.constant 0 : index
    %c0_1 = arith.constant 0 : index
    %3 = vector.load %arg10[%c0, %c0_1] : memref<8x32xf32, #tpu.memory_space<vmem>>, vector<8x32xf32>
    %c0_2 = arith.constant 0 : index
    %c0_3 = arith.constant 0 : index
    %c0_4 = arith.constant 0 : index
    %4 = vector.load %arg7[%c0_2, %c0_3, %c0_4] : memref<1x8x128xf32, #tpu.memory_space<vmem>>, vector<1x8x128xf32>
    %5 = vector.shape_cast %4 : vector<1x8x128xf32> to vector<8x128xf32>
    %6 = vector.extract_strided_slice %5 {offsets = [0, 0], sizes = [1, 32], strides = [1, 1]} : vector<8x128xf32> to vector<1x32xf32>
    %7 = vector.extract_strided_slice %5 {offsets = [1, 0], sizes = [1, 32], strides = [1, 1]} : vector<8x128xf32> to vector<1x32xf32>
    %8 = vector.extract_strided_slice %5 {offsets = [2, 0], sizes = [1, 32], strides = [1, 1]} : vector<8x128xf32> to vector<1x32xf32>
    %9 = vector.extract_strided_slice %5 {offsets = [3, 0], sizes = [1, 64], strides = [1, 1]} : vector<8x128xf32> to vector<1x64xf32>
    %10 = vector.extract_strided_slice %5 {offsets = [4, 0], sizes = [1, 32], strides = [1, 1]} : vector<8x128xf32> to vector<1x32xf32>
    %11 = vector.extract_strided_slice %5 {offsets = [5, 0], sizes = [1, 32], strides = [1, 1]} : vector<8x128xf32> to vector<1x32xf32>
    %12 = vector.extract_strided_slice %5 {offsets = [6, 0], sizes = [1, 32], strides = [1, 1]} : vector<8x128xf32> to vector<1x32xf32>
    %13 = vector.shape_cast %3 : vector<8x32xf32> to vector<1x8x32xf32>
    %14 = vector.shape_cast %13 : vector<1x8x32xf32> to vector<1x8x32xf32>
    %15 = vector.broadcast %14 : vector<1x8x32xf32> to vector<12x8x32xf32>
    %c0_5 = arith.constant 0 : index
    %c0_6 = arith.constant 0 : index
    %c0_7 = arith.constant 0 : index
    %c0_8 = arith.constant 0 : index
    %16 = vector.load %arg2[%c0_5, %c0_6, %c0_7, %c0_8] : memref<1x12x32x8xf32, #tpu.memory_space<vmem>>, vector<1x12x32x8xf32>
    %17 = vector.shape_cast %16 : vector<1x12x32x8xf32> to vector<12x32x8xf32>
    %cst = arith.constant dense<0.000000e+00> : vector<12x8x8xf32>
    %18 = tpu.matmul %15, %17, %cst {dimension_numbers = #tpu.dot_dimension_numbers<[2], [1], [1], [2], [0, 0, 0, 1, 1, 2], [0], [0]>} : vector<12x8x32xf32>, vector<12x32x8xf32>, vector<12x8x8xf32> -> vector<12x8x8xf32>
    %c0_9 = arith.constant 0 : index
    %c0_10 = arith.constant 0 : index
    %c0_11 = arith.constant 0 : index
    %c0_12 = arith.constant 0 : index
    %19 = vector.load %arg3[%c0_9, %c0_10, %c0_11, %c0_12] : memref<1x12x1x8xf32, #tpu.memory_space<vmem>>, vector<1x12x1x8xf32>
    %20 = vector.shape_cast %19 : vector<1x12x1x8xf32> to vector<12x1x8xf32>
    %21 = vector.broadcast %20 : vector<12x1x8xf32> to vector<12x8x8xf32>
    %22 = arith.addf %18, %21 : vector<12x8x8xf32>
    %23 = vector.extract_strided_slice %22 {offsets = [0, 0, 0], sizes = [4, 8, 8], strides = [1, 1, 1]} : vector<12x8x8xf32> to vector<4x8x8xf32>
    %24 = vector.extract_strided_slice %22 {offsets = [4, 0, 0], sizes = [4, 8, 8], strides = [1, 1, 1]} : vector<12x8x8xf32> to vector<4x8x8xf32>
    %25 = vector.extract_strided_slice %22 {offsets = [8, 0, 0], sizes = [4, 8, 8], strides = [1, 1, 1]} : vector<12x8x8xf32> to vector<4x8x8xf32>
    %cst_13 = arith.constant dense<0.000000e+00> : vector<4x8x8xf32>
    %26 = tpu.matmul %23, %24, %cst_13 {dimension_numbers = #tpu.dot_dimension_numbers<[2], [2], [1], [1], [0, 0, 0, 1, 1, 1], [0], [0]>} : vector<4x8x8xf32>, vector<4x8x8xf32>, vector<4x8x8xf32> -> vector<4x8x8xf32>
    %cst_14 = arith.constant 0.353553385 : f32
    %27 = vector.broadcast %cst_14 : f32 to vector<4x8x8xf32>
    %28 = arith.mulf %26, %27 : vector<4x8x8xf32>
    %cst_15 = arith.constant dense<0xFF800000> : vector<4x8xf32>
    %29 = vector.multi_reduction <maximumf>, %28, %cst_15 [2] : vector<4x8x8xf32> to vector<4x8xf32>
    %30 = vector.shape_cast %29 : vector<4x8xf32> to vector<4x8x1xf32>
    %31 = vector.broadcast %30 : vector<4x8x1xf32> to vector<4x8x8xf32>
    %32 = arith.subf %28, %31 : vector<4x8x8xf32>
    %33 = math.exp %32 : vector<4x8x8xf32>
    %cst_16 = arith.constant dense<0.000000e+00> : vector<4x8xf32>
    %34 = vector.multi_reduction <add>, %33, %cst_16 [2] : vector<4x8x8xf32> to vector<4x8xf32>
    %35 = vector.shape_cast %34 : vector<4x8xf32> to vector<4x8x1xf32>
    %36 = tpu.reciprocal %35 {approx = true} : vector<4x8x1xf32> -> vector<4x8x1xf32>
    %37 = vector.broadcast %36 : vector<4x8x1xf32> to vector<4x8x8xf32>
    %38 = arith.mulf %33, %37 : vector<4x8x8xf32>
    %cst_17 = arith.constant dense<0.000000e+00> : vector<4x8x8xf32>
    %39 = tpu.matmul %38, %25, %cst_17 {dimension_numbers = #tpu.dot_dimension_numbers<[2], [1], [1], [2], [0, 0, 0, 1, 1, 2], [0], [0]>} : vector<4x8x8xf32>, vector<4x8x8xf32>, vector<4x8x8xf32> -> vector<4x8x8xf32>
    %c0_18 = arith.constant 0 : index
    %c0_19 = arith.constant 0 : index
    %c0_20 = arith.constant 0 : index
    %c0_21 = arith.constant 0 : index
    %40 = vector.load %arg4[%c0_18, %c0_19, %c0_20, %c0_21] : memref<1x4x8x32xf32, #tpu.memory_space<vmem>>, vector<1x4x8x32xf32>
    %41 = vector.shape_cast %40 : vector<1x4x8x32xf32> to vector<4x8x32xf32>
    %cst_22 = arith.constant dense<0.000000e+00> : vector<4x8x32xf32>
    %42 = tpu.matmul %39, %41, %cst_22 {dimension_numbers = #tpu.dot_dimension_numbers<[2], [1], [1], [2], [0, 0, 0, 1, 1, 2], [0], [0]>} : vector<4x8x8xf32>, vector<4x8x32xf32>, vector<4x8x32xf32> -> vector<4x8x32xf32>
    %cst_23 = arith.constant dense<0.000000e+00> : vector<8x32xf32>
    %43 = vector.multi_reduction <add>, %42, %cst_23 [0] : vector<4x8x32xf32> to vector<8x32xf32>
    %44 = vector.broadcast %6 : vector<1x32xf32> to vector<8x32xf32>
    %45 = arith.addf %43, %44 : vector<8x32xf32>
    %46 = arith.addf %3, %45 : vector<8x32xf32>
    %cst_24 = arith.constant dense<0.000000e+00> : vector<8xf32>
    %47 = vector.multi_reduction <add>, %46, %cst_24 [1] : vector<8x32xf32> to vector<8xf32>
    %48 = vector.shape_cast %47 : vector<8xf32> to vector<8x1xf32>
    %cst_25 = arith.constant 3.200000e+01 : f32
    %49 = vector.broadcast %cst_25 : f32 to vector<8x1xf32>
    %50 = arith.divf %48, %49 : vector<8x1xf32>
    %51 = vector.broadcast %50 : vector<8x1xf32> to vector<8x32xf32>
    %52 = arith.subf %46, %51 : vector<8x32xf32>
    %53 = vector.broadcast %50 : vector<8x1xf32> to vector<8x32xf32>
    %54 = arith.subf %46, %53 : vector<8x32xf32>
    %55 = arith.mulf %52, %54 : vector<8x32xf32>
    %cst_26 = arith.constant dense<0.000000e+00> : vector<8xf32>
    %56 = vector.multi_reduction <add>, %55, %cst_26 [1] : vector<8x32xf32> to vector<8xf32>
    %57 = vector.shape_cast %56 : vector<8xf32> to vector<8x1xf32>
    %cst_27 = arith.constant 3.200000e+01 : f32
    %58 = vector.broadcast %cst_27 : f32 to vector<8x1xf32>
    %59 = arith.divf %57, %58 : vector<8x1xf32>
    %60 = vector.broadcast %50 : vector<8x1xf32> to vector<8x32xf32>
    %61 = arith.subf %46, %60 : vector<8x32xf32>
    %cst_28 = arith.constant 9.99999996E-13 : f32
    %62 = vector.broadcast %cst_28 : f32 to vector<8x1xf32>
    %63 = arith.addf %59, %62 : vector<8x1xf32>
    %64 = math.rsqrt %63 : vector<8x1xf32>
    %65 = vector.broadcast %64 : vector<8x1xf32> to vector<8x32xf32>
    %66 = arith.mulf %61, %65 : vector<8x32xf32>
    %67 = vector.broadcast %7 : vector<1x32xf32> to vector<8x32xf32>
    %68 = arith.mulf %66, %67 : vector<8x32xf32>
    %69 = vector.broadcast %8 : vector<1x32xf32> to vector<8x32xf32>
    %70 = arith.addf %68, %69 : vector<8x32xf32>
    %c0_29 = arith.constant 0 : index
    %c0_30 = arith.constant 0 : index
    %c0_31 = arith.constant 0 : index
    %71 = vector.load %arg5[%c0_29, %c0_30, %c0_31] : memref<1x32x64xf32, #tpu.memory_space<vmem>>, vector<1x32x64xf32>
    %72 = vector.shape_cast %71 : vector<1x32x64xf32> to vector<32x64xf32>
    %cst_32 = arith.constant dense<0.000000e+00> : vector<8x64xf32>
    %73 = tpu.matmul %70, %72, %cst_32 {dimension_numbers = #tpu.dot_dimension_numbers<[1], [0], [0], [1], [0, 0, 1, 1], [], []>} : vector<8x32xf32>, vector<32x64xf32>, vector<8x64xf32> -> vector<8x64xf32>
    %74 = vector.broadcast %9 : vector<1x64xf32> to vector<8x64xf32>
    %75 = arith.addf %73, %74 : vector<8x64xf32>
    %cst_33 = arith.constant 5.000000e-01 : f32
    %76 = vector.broadcast %cst_33 : f32 to vector<8x64xf32>
    %77 = arith.mulf %76, %75 : vector<8x64xf32>
    %cst_34 = arith.constant 4.471500e-02 : f32
    %78 = vector.broadcast %cst_34 : f32 to vector<8x64xf32>
    %79 = arith.mulf %78, %75 : vector<8x64xf32>
    %80 = arith.mulf %79, %75 : vector<8x64xf32>
    %81 = arith.mulf %80, %75 : vector<8x64xf32>
    %82 = arith.addf %75, %81 : vector<8x64xf32>
    %cst_35 = arith.constant 0.797884583 : f32
    %83 = vector.broadcast %cst_35 : f32 to vector<8x64xf32>
    %84 = arith.mulf %83, %82 : vector<8x64xf32>
    %85 = math.tanh %84 : vector<8x64xf32>
    %cst_36 = arith.constant 1.000000e+00 : f32
    %86 = vector.broadcast %cst_36 : f32 to vector<8x64xf32>
    %87 = arith.addf %86, %85 : vector<8x64xf32>
    %88 = arith.mulf %77, %87 : vector<8x64xf32>
    %c0_37 = arith.constant 0 : index
    %c0_38 = arith.constant 0 : index
    %c0_39 = arith.constant 0 : index
    %89 = vector.load %arg6[%c0_37, %c0_38, %c0_39] : memref<1x64x32xf32, #tpu.memory_space<vmem>>, vector<1x64x32xf32>
    %90 = vector.shape_cast %89 : vector<1x64x32xf32> to vector<64x32xf32>
    %cst_40 = arith.constant dense<0.000000e+00> : vector<8x32xf32>
    %91 = tpu.matmul %88, %90, %cst_40 {dimension_numbers = #tpu.dot_dimension_numbers<[1], [0], [0], [1], [0, 0, 1, 1], [], []>} : vector<8x64xf32>, vector<64x32xf32>, vector<8x32xf32> -> vector<8x32xf32>
    %92 = vector.broadcast %10 : vector<1x32xf32> to vector<8x32xf32>
    %93 = arith.addf %91, %92 : vector<8x32xf32>
    %94 = arith.addf %70, %93 : vector<8x32xf32>
    %cst_41 = arith.constant dense<0.000000e+00> : vector<8xf32>
    %95 = vector.multi_reduction <add>, %94, %cst_41 [1] : vector<8x32xf32> to vector<8xf32>
    %96 = vector.shape_cast %95 : vector<8xf32> to vector<8x1xf32>
    %cst_42 = arith.constant 3.200000e+01 : f32
    %97 = vector.broadcast %cst_42 : f32 to vector<8x1xf32>
    %98 = arith.divf %96, %97 : vector<8x1xf32>
    %99 = vector.broadcast %98 : vector<8x1xf32> to vector<8x32xf32>
    %100 = arith.subf %94, %99 : vector<8x32xf32>
    %101 = vector.broadcast %98 : vector<8x1xf32> to vector<8x32xf32>
    %102 = arith.subf %94, %101 : vector<8x32xf32>
    %103 = arith.mulf %100, %102 : vector<8x32xf32>
    %cst_43 = arith.constant dense<0.000000e+00> : vector<8xf32>
    %104 = vector.multi_reduction <add>, %103, %cst_43 [1] : vector<8x32xf32> to vector<8xf32>
    %105 = vector.shape_cast %104 : vector<8xf32> to vector<8x1xf32>
    %cst_44 = arith.constant 3.200000e+01 : f32
    %106 = vector.broadcast %cst_44 : f32 to vector<8x1xf32>
    %107 = arith.divf %105, %106 : vector<8x1xf32>
    %108 = vector.broadcast %98 : vector<8x1xf32> to vector<8x32xf32>
    %109 = arith.subf %94, %108 : vector<8x32xf32>
    %cst_45 = arith.constant 9.99999996E-13 : f32
    %110 = vector.broadcast %cst_45 : f32 to vector<8x1xf32>
    %111 = arith.addf %107, %110 : vector<8x1xf32>
    %112 = math.rsqrt %111 : vector<8x1xf32>
    %113 = vector.broadcast %112 : vector<8x1xf32> to vector<8x32xf32>
    %114 = arith.mulf %109, %113 : vector<8x32xf32>
    %115 = vector.broadcast %11 : vector<1x32xf32> to vector<8x32xf32>
    %116 = arith.mulf %114, %115 : vector<8x32xf32>
    %117 = vector.broadcast %12 : vector<1x32xf32> to vector<8x32xf32>
    %118 = arith.addf %116, %117 : vector<8x32xf32>
    %c0_46 = arith.constant 0 : index
    %c0_47 = arith.constant 0 : index
    %119 = vector.load %arg10[%c0_46, %c0_47] : memref<8x32xf32, #tpu.memory_space<vmem>>, vector<8x32xf32>
    tpu.vector_store %arg10[%c0_46, %c0_47], %118 {strides = array<i32>} : memref<8x32xf32, #tpu.memory_space<vmem>>, vector<8x32xf32>,
    %c1_i32 = arith.constant 1 : i32
    %120 = arith.cmpi eq, %arg0, %c1_i32 : i32
    %121 = arith.extui %120 : i1 to i32
    %c0_i32_48 = arith.constant 0 : i32
    %122 = arith.cmpi ne, %121, %c0_i32_48 : i32
    scf.if %122 {
      %123 = vector.extract_strided_slice %118 {offsets = [0, 0], sizes = [1, 32], strides = [1, 1]} : vector<8x32xf32> to vector<1x32xf32>
      %c0_49 = arith.constant 0 : index
      %c0_50 = arith.constant 0 : index
      %124 = vector.load %arg8[%c0_49, %c0_50] : memref<40x128xf32, #tpu.memory_space<vmem>>, vector<32x128xf32>
      %c32 = arith.constant 32 : index
      %c0_51 = arith.constant 0 : index
      %125 = vector.load %arg8[%c32, %c0_51] : memref<40x128xf32, #tpu.memory_space<vmem>>, vector<1x128xf32>
      %cst_52 = arith.constant dense<0.000000e+00> : vector<1x128xf32>
      %126 = tpu.matmul %123, %124, %cst_52 {dimension_numbers = #tpu.dot_dimension_numbers<[1], [0], [0], [1], [0, 0, 1, 1], [], []>} : vector<1x32xf32>, vector<32x128xf32>, vector<1x128xf32> -> vector<1x128xf32>
      %127 = arith.addf %126, %125 : vector<1x128xf32>
      %cst_53 = arith.constant dense<0xFF800000> : vector<1xf32>
      %128 = vector.multi_reduction <maximumf>, %127, %cst_53 [1] : vector<1x128xf32> to vector<1xf32>
      %129 = vector.shape_cast %128 : vector<1xf32> to vector<1x1xf32>
      %130 = vector.broadcast %129 : vector<1x1xf32> to vector<1x128xf32>
      %131 = arith.subf %127, %130 : vector<1x128xf32>
      %132 = math.exp %131 : vector<1x128xf32>
      %cst_54 = arith.constant dense<0.000000e+00> : vector<1xf32>
      %133 = vector.multi_reduction <add>, %132, %cst_54 [1] : vector<1x128xf32> to vector<1xf32>
      %134 = vector.shape_cast %133 : vector<1xf32> to vector<1x1xf32>
      %135 = math.log %134 : vector<1x1xf32>
      %136 = vector.broadcast %135 : vector<1x1xf32> to vector<1x128xf32>
      %137 = arith.subf %131, %136 : vector<1x128xf32>
      %138 = vector.shape_cast %137 : vector<1x128xf32> to vector<1x128xf32>
      %139 = vector.broadcast %138 : vector<1x128xf32> to vector<8x128xf32>
      %c0_55 = arith.constant 0 : index
      %c0_56 = arith.constant 0 : index
      %140 = vector.load %arg9[%c0_55, %c0_56] : memref<8x128xf32, #tpu.memory_space<vmem>>, vector<8x128xf32>
      tpu.vector_store %arg9[%c0_55, %c0_56], %139 {strides = array<i32>} : memref<8x128xf32, #tpu.memory_space<vmem>>, vector<8x128xf32>,
    } else {
    }
    return
  }
  func.func @transform_0(%arg0: i32) -> (i32, i32) {
    %c0_i32 = arith.constant 0 : i32
    %c0_i32_0 = arith.constant 0 : i32
    %c0_i32_1 = arith.constant 0 : i32
    return %c0_i32, %c0_i32_0 : i32, i32
  }
  func.func @transform_1(%arg0: i32) -> (i32, i32, i32, i32) {
    %c0_i32 = arith.constant 0 : i32
    %c0_i32_0 = arith.constant 0 : i32
    %c0_i32_1 = arith.constant 0 : i32
    %c0_i32_2 = arith.constant 0 : i32
    return %arg0, %c0_i32, %c0_i32_0, %c0_i32_1 : i32, i32, i32, i32
  }
  func.func @transform_2(%arg0: i32) -> (i32, i32, i32, i32) {
    %c0_i32 = arith.constant 0 : i32
    %c0_i32_0 = arith.constant 0 : i32
    %c0_i32_1 = arith.constant 0 : i32
    %c0_i32_2 = arith.constant 0 : i32
    return %arg0, %c0_i32, %c0_i32_0, %c0_i32_1 : i32, i32, i32, i32
  }
  func.func @transform_3(%arg0: i32) -> (i32, i32, i32, i32) {
    %c0_i32 = arith.constant 0 : i32
    %c0_i32_0 = arith.constant 0 : i32
    %c0_i32_1 = arith.constant 0 : i32
    %c0_i32_2 = arith.constant 0 : i32
    return %arg0, %c0_i32, %c0_i32_0, %c0_i32_1 : i32, i32, i32, i32
  }
  func.func @transform_4(%arg0: i32) -> (i32, i32, i32) {
    %c0_i32 = arith.constant 0 : i32
    %c0_i32_0 = arith.constant 0 : i32
    %c0_i32_1 = arith.constant 0 : i32
    return %arg0, %c0_i32, %c0_i32_0 : i32, i32, i32
  }
  func.func @transform_5(%arg0: i32) -> (i32, i32, i32) {
    %c0_i32 = arith.constant 0 : i32
    %c0_i32_0 = arith.constant 0 : i32
    %c0_i32_1 = arith.constant 0 : i32
    return %arg0, %c0_i32, %c0_i32_0 : i32, i32, i32
  }
  func.func @transform_6(%arg0: i32) -> (i32, i32, i32) {
    %c0_i32 = arith.constant 0 : i32
    %c0_i32_0 = arith.constant 0 : i32
    %c0_i32_1 = arith.constant 0 : i32
    return %arg0, %c0_i32, %c0_i32_0 : i32, i32, i32
  }
  func.func @transform_7(%arg0: i32) -> (i32, i32) {
    %c0_i32 = arith.constant 0 : i32
    %c0_i32_0 = arith.constant 0 : i32
    %c0_i32_1 = arith.constant 0 : i32
    return %c0_i32, %c0_i32_0 : i32, i32
  }
  func.func @transform_8(%arg0: i32) -> (i32, i32) {
    %c0_i32 = arith.constant 0 : i32
    %c0_i32_0 = arith.constant 0 : i32
    %c0_i32_1 = arith.constant 0 : i32
    return %c0_i32, %c0_i32_0 : i32, i32
  }
}

</mosaic_0001>

<bundles_post_ra>
// kernel: substrate_classifier_forward.1
= control target key start
LH: loop header
LB: loop body
LE: loop exit
PB: predicated region body
PF: predicated region fallthrough
CT: control target
= control target key end

     0   :  { %s3332_s27 = smov 0   ;;  %s3661_s0 = inlined_call_operand.vmem [shape: f32[8,32], index: 0, kind: input, shape index: {}]   ;;  %s3662_s1 = inlined_call_operand.vmem [shape: f32[2,12,32,8], index: 1, kind: input, shape index: {}]   ;;  %s3663_s2 = inlined_call_operand.vmem [shape: f32[2,12,1,8], index: 2, kind: input, shape index: {}]   ;;  %s3664_s3 = inlined_call_operand.vmem [shape: f32[2,4,8,32], index: 3, kind: input, shape index: {}]   ;;  %s3665_s4 = inlined_call_operand.vmem [shape: f32[2,32,64], index: 4, kind: input, shape index: {}]   ;;  %s3666_s5 = inlined_call_operand.vmem [shape: f32[2,64,32], index: 5, kind: input, shape index: {}]   ;;  %s3667_s6 = inlined_call_operand.vmem [shape: f32[2,8,128], index: 6, kind: input, shape index: {}]   ;;  %s3668_s7 = inlined_call_operand.vmem [shape: f32[40,128], index: 7, kind: input, shape index: {}]   ;;  %s3669_s8 = inlined_call_operand.vmem [shape: f32[8,128], index: 8, kind: output, shape index: {}]  }
   0x1 LB: > { %s3338_s28 = sadd.s32 4294967295, %s3279_s27   ;;  %p2740_p0 = scmp.ge.s32.totalorder %s3279_s27, 1  ;;  %s3279_s27 = sphi %s3332_s27, %s18_s27  }
   0x2   : > { %p305_p1 = scmp.lt.s32.totalorder %s3279_s27, 3 }
   0x4   : > { %p306_p2 = pnand %p2740_p0, %p305_p1 }
   0x5   : > { %p357_p3 = scmp.lt.s32.totalorder (!%p306_p2), %s3338_s28, 1  ;;  %p2749_p4 = scmp.ne.s32.totalorder (!%p306_p2), %s3338_s28, 0 }
   0x6   : > { %309 = sbr.rel (%p306_p2) target bundleno = 2849 (0xb21), region = 52 }
   0xd   : > { %s358_s29 = scalar_select %p357_p3, %s3338_s28, 1 }
   0xe   : > { %388 = sbr.rel (%p2749_p4) target bundleno = 21 (0x15), region = 56  ;;  %v389_v0 = vld [vmem:[%s3661_s0] sm:$0xff] (!%p2749_p4)  ;;  %vm390_vm0 = vcmask (!%p2749_p4), 261120  }
   0xf   : > { %s3231_s30 = smul.u32 384, %s358_s29  ;;  %s2796_s9 = sshll.u32 %s358_s29, 5  ;;  %391 = vst.msk [vmem:[#allocation2] sm:$0xff] (!%p2749_p4), %vm390_vm0, %v389_v0 }
  0x10   : > { %s3232_s10 = smul.u32 12, %s358_s29  ;;  %s3347_s13 = scalar_lea.vmem %s3664_s3, %s2796_s9 }
  0x11   : > { %s3352_s16 = scalar_lea.vmem %s3662_s1, %s3231_s30  ;;  %s3357_s19 = scalar_lea.vmem %s3665_s4, %s2796_s9 }
  0x12   : > { %s3362_s22 = scalar_lea.vmem %s3663_s2, %s3232_s10  ;;  %s2798_s23 = sshll.u32 %s358_s29, 6 }
  0x13   : > { %s3367_s26 = scalar_lea.vmem %s3666_s5, %s2798_s23  ;;  %s2748_s11 = sshll.u32 %s358_s29, 3 }
  0x14   : > { %s3372_s14 = scalar_lea.vmem %s3667_s6, %s2748_s11 }
  0x15 PF: > { %v394_v1 = vld [vmem:[%s3352_s16] sm:$0xff]  ;;  %v395_v2 = vld [vmem:[%s3352_s16 + $0x8] sm:$0xff]  ;;  %v3281_v4 = vmov 0.0|0.0   ;;  %v396_v7 = vld [vmem:[%s3352_s16 + $0x10] sm:$0xff]  ;;  %vm3282_vm1 = vmmov 0   ;;  %v3283_v12 = vmov 0.0  }
  0x16   : > { %v398_v3 = vld [vmem:[%s3352_s16 + $0x20] sm:$0xff]  ;;  %3135 = vmatprep.subr.bf16.mxu0 %v3281_v4  ;;  %3141 = vmatprep.subr.bf16.mxu1 %v3281_v4  ;;  %v3136_v5 = vpack.c.bf16 %v395_v2, %v394_v1  ;;  %v399_v6 = vld [vmem:[%s3352_s16 + $0x28] sm:$0xff]  ;;  %v397_v8 = vld [vmem:[%s3352_s16 + $0x18] sm:$0xff]  ;;  %vm526_vm2 = vcmask 261120   ;;  %vm1370_vm3 = vcmask 64512   ;;  %vm2450_vm4 = vcmask 523264  }
  0x17   : > { %v3142_v9 = vpack.c.bf16 %v399_v6, %v398_v3  ;;  %v400_v10 = vld [vmem:[%s3352_s16 + $0x30] sm:$0xff]  ;;  %v401_v11 = vld [vmem:[%s3352_s16 + $0x38] sm:$0xff]  ;;  %2910 = vmatprep.mubr.msk.f32.mxu0 %vm3282_vm1, %v3283_v12  ;;  %2921 = vmatprep.mubr.msk.f32.mxu1 %vm3282_vm1, %v3283_v12  ;;  %v3139_v13 = vpack.c.bf16 %v397_v8, %v396_v7  ;;  %v402_v15 = vld [vmem:[%s3352_s16 + $0x40] sm:$0xff]  ;;  %p2792_p5 = scmp.ne.s32.totalorder %s3338_s28, 1 }
  0x18   : > { %3137 = vmatpush3.bf16.msra.mxu0 %v3136_v5  ;;  %v3145_v14 = vpack.c.bf16 %v401_v11, %v400_v10  ;;  %v403_v16 = vld [vmem:[%s3352_s16 + $0x48] sm:$0xff]  ;;  %v406_v17 = vld [vmem:[%s3352_s16 + $0x60] sm:$0xff]  ;;  %v404_v22 = vld [vmem:[%s3352_s16 + $0x50] sm:$0xff]  ;;  %vm3285_vm5 = vmmov (!%p2792_p5), 0   ;;  %vm2631_vm6 = vcmask (!%p2792_p5), 1040384  }
  0x19   : > { %3143 = vmatpush3.bf16.msra.mxu1 %v3142_v9  ;;  %3138 = vmatprep.subr.bf16.mxu0 %v3281_v4  ;;  %v407_v18 = vld [vmem:[%s3352_s16 + $0x68] sm:$0xff]  ;;  %v3398_v19 = vld [vmem:[#allocation2] sm:$0xff]  ;;  %v3148_v20 = vpack.c.bf16 %v403_v16, %v402_v15  ;;  %v405_v23 = vld [vmem:[%s3352_s16 + $0x58] sm:$0xff] }
  0x1a   : > { %3144 = vmatprep.subr.bf16.mxu1 %v3281_v4  ;;  %v3154_v21 = vpack.c.bf16 %v407_v18, %v406_v17  ;;  %v408_v24 = vld [vmem:[%s3352_s16 + $0x70] sm:$0xff]  ;;  %v409_v25 = vld [vmem:[%s3352_s16 + $0x78] sm:$0xff]  ;;  %v3151_v26 = vpack.c.bf16 %v405_v23, %v404_v22  ;;  %v410_v28 = vld [vmem:[%s3352_s16 + $0x80] sm:$0xff] }
  0x1b   : > { %v3157_v27 = vpack.c.bf16 %v409_v25, %v408_v24  ;;  %v411_v29 = vld [vmem:[%s3352_s16 + $0x88] sm:$0xff]  ;;  %v414_v30 = vld [vmem:[%s3352_s16 + $0xa0] sm:$0xff]  ;;  %v412_v34 = vld [vmem:[%s3352_s16 + $0x90] sm:$0xff] }
  0x1c   : > { %3140 = vmatpush3.bf16.msra.mxu0 %v3139_v13  ;;  %v415_v31 = vld [vmem:[%s3352_s16 + $0xa8] sm:$0xff]  ;;  %v3160_v32 = vpack.c.bf16 %v411_v29, %v410_v28  ;;  %v413_v35 = vld [vmem:[%s3352_s16 + $0x98] sm:$0xff]  ;;  %v416_v36 = vld [vmem:[%s3352_s16 + $0xb0] sm:$0xff] }
  0x1d   : > { %3146 = vmatpush3.bf16.msra.mxu1 %v3145_v14  ;;  %3147 = vmatprep.subr.bf16.mxu0 %v3281_v4  ;;  %v3166_v33 = vpack.c.bf16 %v415_v31, %v414_v30  ;;  %v417_v37 = vld [vmem:[%s3352_s16 + $0xb8] sm:$0xff]  ;;  %v3163_v38 = vpack.c.bf16 %v413_v35, %v412_v34  ;;  %v418_v40 = vld [vmem:[%s3352_s16 + $0xc0] sm:$0xff]  ;;  %v419_v41 = vld [vmem:[%s3352_s16 + $0xc8] sm:$0xff] }
  0x1e   : > { %3153 = vmatprep.subr.bf16.mxu1 %v3281_v4  ;;  %v3169_v39 = vpack.c.bf16 %v417_v37, %v416_v36  ;;  %v422_v42 = vld [vmem:[%s3352_s16 + $0xe0] sm:$0xff]  ;;  %v423_v43 = vld [vmem:[%s3352_s16 + $0xe8] sm:$0xff]  ;;  %v3172_v44 = vpack.c.bf16 %v419_v41, %v418_v40  ;;  %v420_v46 = vld [vmem:[%s3352_s16 + $0xd0] sm:$0xff] }
  0x1f   : > { %2911 = vmatmul.mubr.msk.f32.vlgmr.msra.gmra.mrb[0].mxu0 %vm526_vm2, %v3398_v19  ;;  %v3178_v45 = vpack.c.bf16 %v423_v43, %v422_v42  ;;  %v421_v47 = vld [vmem:[%s3352_s16 + $0xd8] sm:$0xff]  ;;  %v424_v48 = vld [vmem:[%s3352_s16 + $0xf0] sm:$0xff]  ;;  %v426_v52 = vld [vmem:[%s3352_s16 + $0x100] sm:$0xff] }
  0x20   : > { %2922 = vmatmul.mubr.msk.f32.vlgmr.msra.gmra.mrb[0].mxu1 %vm526_vm2, %v3398_v19  ;;  %3149 = vmatpush3.bf16.msra.mxu0 %v3148_v20  ;;  %v425_v49 = vld [vmem:[%s3352_s16 + $0xf8] sm:$0xff]  ;;  %v3175_v50 = vpack.c.bf16 %v421_v47, %v420_v46  ;;  %v427_v53 = vld [vmem:[%s3352_s16 + $0x108] sm:$0xff]  ;;  %v428_v55 = vld [vmem:[%s3352_s16 + $0x110] sm:$0xff] }
  0x21   : > { %3155 = vmatpush3.bf16.msra.mxu1 %v3154_v21  ;;  %3150 = vmatprep.subr.bf16.mxu0 %v3281_v4  ;;  %v3181_v51 = vpack.c.bf16 %v425_v49, %v424_v48  ;;  %v3184_v54 = vpack.c.bf16 %v427_v53, %v426_v52  ;;  %v429_v56 = vld [vmem:[%s3352_s16 + $0x118] sm:$0xff]  ;;  %v430_v58 = vld [vmem:[%s3352_s16 + $0x120] sm:$0xff]  ;;  %v431_v59 = vld [vmem:[%s3352_s16 + $0x128] sm:$0xff] }
  0x22   : > { %3156 = vmatprep.subr.bf16.mxu1 %v3281_v4  ;;  %2932 = vmatprep.mubr.msk.f32.mxu0 %vm3282_vm1, %v3283_v12  ;;  %v3187_v57 = vpack.c.bf16 %v429_v56, %v428_v55  ;;  %v434_v60 = vld [vmem:[%s3352_s16 + $0x140] sm:$0xff]  ;;  %v3190_v61 = vpack.c.bf16 %v431_v59, %v430_v58  ;;  %v435_v62 = vld [vmem:[%s3352_s16 + $0x148] sm:$0xff]  ;;  %v432_v0 = vld [vmem:[%s3352_s16 + $0x130] sm:$0xff] }
  0x23   : > { %2943 = vmatprep.mubr.msk.f32.mxu1 %vm3282_vm1, %v3283_v12  ;;  %v3196_v63 = vpack.c.bf16 %v435_v62, %v434_v60  ;;  %v433_v1 = vld [vmem:[%s3352_s16 + $0x138] sm:$0xff]  ;;  %v436_v2 = vld [vmem:[%s3352_s16 + $0x150] sm:$0xff]  ;;  %v438_v7 = vld [vmem:[%s3352_s16 + $0x160] sm:$0xff] }
  0x24   : > { %3152 = vmatpush3.bf16.msra.mxu0 %v3151_v26  ;;  %v3193_v3 = vpack.c.bf16 %v433_v1, %v432_v0  ;;  %v437_v5 = vld [vmem:[%s3352_s16 + $0x158] sm:$0xff]  ;;  %v439_v8 = vld [vmem:[%s3352_s16 + $0x168] sm:$0xff]  ;;  %v440_v10 = vld [vmem:[%s3352_s16 + $0x170] sm:$0xff] }
  0x25   : > { %3158 = vmatpush3.bf16.msra.mxu1 %v3157_v27  ;;  %3159 = vmatprep.subr.bf16.mxu0 %v3281_v4  ;;  %v3199_v6 = vpack.c.bf16 %v437_v5, %v436_v2  ;;  %v3202_v9 = vpack.c.bf16 %v439_v8, %v438_v7  ;;  %v441_v11 = vld [vmem:[%s3352_s16 + $0x178] sm:$0xff]  ;;  %v2754_v23 = vld [vmem:[%s3362_s22 + $0x4] ss:$0 sm:$0xff]  ;;  %v2755_v25 = vld [vmem:[%s3362_s22 + $0x5] ss:$0 sm:$0xff] }
  0x26   : > { %3165 = vmatprep.subr.bf16.mxu1 %v3281_v4  ;;  %v3205_v13 = vpack.c.bf16 %v441_v11, %v440_v10  ;;  %v2750_v26 = vld [vmem:[%s3362_s22] ss:$0 sm:$0xff]  ;;  %v2756_v34 = vld [vmem:[%s3362_s22 + $0x6] ss:$0 sm:$0xff]  ;;  %v2757_v35 = vld [vmem:[%s3362_s22 + $0x7] ss:$0 sm:$0xff] }
  0x27   : > { %2933 = vmatmul.mubr.msk.f32.vlgmr.msra.gmra.mrb[2].mxu0 %vm526_vm2, %v3398_v19  ;;  %v2753_v42 = vld [vmem:[%s3362_s22 + $0x3] ss:$0 sm:$0xff]  ;;  %v2758_v47 = vld [vmem:[%s3362_s22 + $0x8] ss:$0 sm:$0xff] }
  0x28   : > { %2944 = vmatmul.mubr.msk.f32.vlgmr.msra.gmra.mrb[2].mxu1 %vm526_vm2, %v3398_v19  ;;  %3161 = vmatpush3.bf16.msra.mxu0 %v3160_v32 }
  0x29   : > { %3167 = vmatpush3.bf16.msra.mxu1 %v3166_v33  ;;  %3162 = vmatprep.subr.bf16.mxu0 %v3281_v4  ;;  %v2751_v33 = vld [vmem:[%s3362_s22 + $0x1] ss:$0 sm:$0xff] }
  0x2a   : > { %3168 = vmatprep.subr.bf16.mxu1 %v3281_v4  ;;  %2954 = vmatprep.mubr.msk.f32.mxu0 %vm3282_vm1, %v3283_v12 }
  0x2b   : > { %2965 = vmatprep.mubr.msk.f32.mxu1 %vm3282_vm1, %v3283_v12 }
  0x2c   : > { %3164 = vmatpush3.bf16.msra.mxu0 %v3163_v38  ;;  %v2752_v38 = vld [vmem:[%s3362_s22 + $0x2] ss:$0 sm:$0xff] }
  0x2d   : > { %3170 = vmatpush3.bf16.msra.mxu1 %v3169_v39  ;;  %3171 = vmatprep.subr.bf16.mxu0 %v3281_v4 }
  0x2e   : > { %3177 = vmatprep.subr.bf16.mxu1 %v3281_v4 }
  0x2f   : > { %2955 = vmatmul.mubr.msk.f32.vlgmr.msra.gmra.mrb[4].mxu0 %vm526_vm2, %v3398_v19 }
  0x30   : > { %2966 = vmatmul.mubr.msk.f32.vlgmr.msra.gmra.mrb[4].mxu1 %vm526_vm2, %v3398_v19  ;;  %3173 = vmatpush3.bf16.msra.mxu0 %v3172_v44 }
  0x31   : > { %3179 = vmatpush3.bf16.msra.mxu1 %v3178_v45  ;;  %3174 = vmatprep.subr.bf16.mxu0 %v3281_v4 }
  0x32   : > { %3180 = vmatprep.subr.bf16.mxu1 %v3281_v4  ;;  %2976 = vmatprep.mubr.msk.f32.mxu0 %vm3282_vm1, %v3283_v12 }
  0x33   : > { %2987 = vmatprep.mubr.msk.f32.mxu1 %vm3282_vm1, %v3283_v12 }
  0x34   : > { %3176 = vmatpush3.bf16.msra.mxu0 %v3175_v50 }
  0x35   : > { %3182 = vmatpush3.bf16.msra.mxu1 %v3181_v51  ;;  %3183 = vmatprep.subr.bf16.mxu0 %v3281_v4  ;;  %v2759_v51 = vld [vmem:[%s3362_s22 + $0x9] ss:$0 sm:$0xff] }
  0x36   : > { %3189 = vmatprep.subr.bf16.mxu1 %v3281_v4 }
  0x37   : > { %2977 = vmatmul.mubr.msk.f32.vlgmr.msra.gmra.mrb[6].mxu0 %vm526_vm2, %v3398_v19 }
  0x38   : > { %2988 = vmatmul.mubr.msk.f32.vlgmr.msra.gmra.mrb[6].mxu1 %vm526_vm2, %v3398_v19  ;;  %3185 = vmatpush3.bf16.msra.mxu0 %v3184_v54 }
  0x39   : > { %3186 = vmatprep.subr.bf16.mxu0 %v3281_v4  ;;  %2998 = vmatprep.mubr.msk.f32.mxu0 %vm3282_vm1, %v3283_v12 }
  0x3a   : > { %3009 = vmatprep.mubr.msk.f32.mxu1 %vm3282_vm1, %v3283_v12  ;;  %3191 = vmatpush3.bf16.msra.mxu1 %v3190_v61 }
  0x3b   : > { %3192 = vmatprep.subr.bf16.mxu1 %v3281_v4 }
  0x3c   : > { %3188 = vmatpush3.bf16.msra.mxu0 %v3187_v57 }
  0x3d   : > { %3195 = vmatprep.subr.bf16.mxu0 %v3281_v4 }
  0x3e   : > { %3194 = vmatpush3.bf16.msra.mxu1 %v3193_v3 }
  0x3f   : > { %2999 = vmatmul.mubr.msk.f32.vlgmr.msra.gmra.mrb[8].mxu0 %vm526_vm2, %v3398_v19  ;;  %3201 = vmatprep.subr.bf16.mxu1 %v3281_v4 }
  0x40   : > { %3197 = vmatpush3.bf16.msra.mxu0 %v3196_v63  ;;  %3020 = vmatprep.mubr.msk.f32.mxu0 %vm3282_vm1, %v3283_v12 }
  0x41   : > { %3198 = vmatprep.subr.bf16.mxu0 %v3281_v4  ;;  %3010 = vmatmul.mubr.msk.f32.vlgmr.msra.gmra.mrb[8].mxu1 %vm526_vm2, %v3398_v19 }
  0x42   : > { %3203 = vmatpush3.bf16.msra.mxu1 %v3202_v9  ;;  %3031 = vmatprep.mubr.msk.f32.mxu1 %vm3282_vm1, %v3283_v12 }
  0x43   : > { %3204 = vmatprep.subr.bf16.mxu1 %v3281_v4 }
  0x44   : > { %3200 = vmatpush3.bf16.msra.mxu0 %v3199_v6 }
  0x45   : > { %3034 = vmatprep.subr.mxu0 %v3283_v12 }
  0x46   : > { %3206 = vmatpush3.bf16.msra.mxu1 %v3205_v13 }
  0x47   : > { %3021 = vmatmul.mubr.msk.f32.vlgmr.msra.gmra.mrb[10].mxu0 %vm526_vm2, %v3398_v19  ;;  %3049 = vmatprep.subr.mxu1 %v3283_v12 }
  0x48   : > { %3036 = vmatprep.mubr.msk.f32.mxu0 %vm3282_vm1, %v3283_v12 }
  0x49   : > { %3032 = vmatmul.mubr.msk.f32.vlgmr.msra.gmra.mrb[10].mxu1 %vm526_vm2, %v3398_v19 }
  0x4a   : > { %3051 = vmatprep.mubr.msk.f32.mxu1 %vm3282_vm1, %v3283_v12 }
  0xf2   : > { %v596_v14 = vpop.f32.mrb[0].mxu0 }
  0xf3   : > { %v2912_v15 = vpop.f32.mrb[1].mxu0  ;;  %v666_v16 = vpop.f32.mrb[0].mxu1  ;;  %v597_v32 = vadd.f32 %v2750_v26, %v596_v14 }
  0xf4   : > { %v2923_v17 = vpop.f32.mrb[1].mxu1  ;;  %v667_v36 = vadd.f32 %v2751_v33, %v666_v16 }
  0xfa   : > { %v736_v18 = vpop.f32.mrb[2].mxu0 }
  0xfb   : > { %v2934_v20 = vpop.f32.mrb[3].mxu0  ;;  %v806_v21 = vpop.f32.mrb[2].mxu1  ;;  %v737_v45 = vadd.f32 %v2752_v38, %v736_v18 }
  0xfc   : > { %v2945_v22 = vpop.f32.mrb[3].mxu1  ;;  %v807_v46 = vadd.f32 %v2753_v42, %v806_v21  ;;  %v2761_v42 = vld [vmem:[%s3362_s22 + $0xb] ss:$0 sm:$0xff] }
 0x102   : > { %v876_v24 = vpop.f32.mrb[4].mxu0 }
 0x103   : > { %v877_v27 = vadd.f32 %v2754_v23, %v876_v24  ;;  %v2956_v28 = vpop.f32.mrb[5].mxu0  ;;  %v946_v29 = vpop.f32.mrb[4].mxu1 }
 0x104   : > { %v2967_v30 = vpop.f32.mrb[5].mxu1  ;;  %v947_v31 = vadd.f32 %v2755_v25, %v946_v29 }
 0x105   : > { %3035 = vmatpush3.xpose.msk.msra.mxu0 %vm1370_vm3, %v877_v27 }
 0x106   : > { %3039 = vmatprep.subr.mxu0 %v3283_v12 }
 0x108   : > { %3037 = vmatmul.mubr.msk.f32.vlgmr.msra.gmra.mrb[12].mxu0 %vm1370_vm3, %v597_v32 }
 0x109   : > { %3040 = vmatpush3.xpose.msk.msra.mxu0 %vm1370_vm3, %v947_v31  ;;  %3041 = vmatprep.mubr.msk.f32.mxu0 %vm3282_vm1, %v3283_v12 }
 0x10a   : > { %v1016_v37 = vpop.f32.mrb[6].mxu0  ;;  %3044 = vmatprep.subr.mxu0 %v3283_v12 }
 0x10b   : > { %v1017_v39 = vadd.f32 %v2756_v34, %v1016_v37  ;;  %v1086_v40 = vpop.f32.mrb[6].mxu1  ;;  %v2978_v41 = vpop.f32.mrb[7].mxu0  ;;  %v2760_v37 = vld [vmem:[%s3362_s22 + $0xa] ss:$0 sm:$0xff] }
 0x10c   : > { %v1087_v43 = vadd.f32 %v2757_v35, %v1086_v40  ;;  %3042 = vmatmul.mubr.msk.f32.vlgmr.msra.gmra.mrb[14].mxu0 %vm1370_vm3, %v667_v36  ;;  %v2989_v44 = vpop.f32.mrb[7].mxu1 }
 0x10d   : > { %3045 = vmatpush3.xpose.msk.msra.mxu0 %vm1370_vm3, %v1017_v39  ;;  %3046 = vmatprep.mubr.msk.f32.mxu0 %vm3282_vm1, %v3283_v12 }
 0x10e   : > { %3050 = vmatpush3.xpose.msk.msra.mxu1 %vm1370_vm3, %v1087_v43  ;;  %3054 = vmatprep.subr.mxu0 %v3283_v12 }
 0x10f   : > { %3059 = vmatprep.subr.mxu1 %v3283_v12 }
 0x110   : > { %3047 = vmatmul.mubr.msk.f32.vlgmr.msra.gmra.mrb[16].mxu0 %vm1370_vm3, %v737_v45 }
 0x111   : > { %3052 = vmatmul.mubr.msk.f32.vlgmr.msra.gmra.mrb[12].mxu1 %vm1370_vm3, %v807_v46  ;;  %3056 = vmatprep.mubr.msk.f32.mxu0 %vm3282_vm1, %v3283_v12 }
 0x112   : > { %3061 = vmatprep.mubr.msk.f32.mxu1 %vm3282_vm1, %v3283_v12  ;;  %v1156_v48 = vpop.f32.mrb[8].mxu0 }
 0x113   : > { %v1157_v49 = vadd.f32 %v2758_v47, %v1156_v48  ;;  %v3000_v50 = vpop.f32.mrb[9].mxu0 }
 0x114   : > { %v1226_v52 = vpop.f32.mrb[8].mxu1  ;;  %v2015_v50 = vld [vmem:[%s3347_s13] sm:$0xff] }
 0x115   : > { %3055 = vmatpush3.msra.mxu0 %v1157_v49  ;;  %v1227_v53 = vadd.f32 %v2759_v51, %v1226_v52  ;;  %v3011_v54 = vpop.f32.mrb[9].mxu1  ;;  %v2016_v51 = vld [vmem:[%s3347_s13 + $0x8] sm:$0xff]  ;;  %v2017_v52 = vld [vmem:[%s3347_s13 + $0x10] sm:$0xff] }
 0x116   : > { %3064 = vmatprep.subr.mxu0 %v3283_v12 }
 0x117   : > { %3060 = vmatpush3.msra.mxu1 %v1227_v53 }
 0x118   : > { %3069 = vmatprep.subr.mxu1 %v3283_v12 }
 0x11a   : > { %v3537_v55 = vpop.f32.mrb[10].mxu0 }
 0x11b   : > { %v3022_v56 = vpop.f32.mrb[11].mxu0  ;;  %v1297_v41 = vadd.f32 %v2760_v37, %v3537_v55  ;;  %v2018_v55 = vld [vmem:[%s3347_s13 + $0x18] sm:$0xff] }
 0x11c   : > { %v3540_v57 = vpop.f32.mrb[10].mxu1 }
 0x11d   : > { %v3033_v58 = vpop.f32.mrb[11].mxu1  ;;  %v1367_v45 = vadd.f32 %v2761_v42, %v3540_v57 }
 0x1db   : > { %v1443_v59 = vpop.f32.mrb[12].mxu0 }
 0x1dc   : > { %v1675_v60 = vmul.f32 0.35355338, %v1443_v59  ;;  %v3038_v61 = vpop.f32.mrb[13].mxu0 }
 0x1de   : > { %v1679_v62 = vsel %vm1370_vm3, %v1675_v60, -inf }
 0x1df   : > { %1680 = vmax.xlane.f32.xlu0 %v1679_v62  ;;  %v1519_v63 = vpop.f32.mrb[14].mxu0 }
 0x1e0   : > { %v1676_v0 = vmul.f32 0.35355338, %v1519_v63  ;;  %v3043_v1 = vpop.f32.mrb[15].mxu0  ;;  %v2318_v63 = vlaneseq }
 0x1e2   : > { %v1682_v2 = vsel %vm1370_vm3, %v1676_v0, -inf }
 0x1e3   : > { %1683 = vmax.xlane.f32.xlu0 %v1682_v2  ;;  %v1595_v3 = vpop.f32.mrb[16].mxu0  ;;  %v3588_v2 = vshrl.u32 %v2318_v63, 7 }
 0x1e4   : > { %v1671_v5 = vpop.f32.mrb[12].mxu1  ;;  %v1677_v6 = vmul.f32 0.35355338, %v1595_v3  ;;  %v3048_v7 = vpop.f32.mrb[17].mxu0 }
 0x1e5   : > { %v3053_v8 = vpop.f32.mrb[13].mxu1  ;;  %v1678_v9 = vmul.f32 0.35355338, %v1671_v5  ;;  %v2345_v37 = vsub.s32 2, %v3588_v2 }
 0x1e6   : > { %v1685_v10 = vsel %vm1370_vm3, %v1677_v6, -inf }
 0x1e7   : > { %1686 = vmax.xlane.f32.xlu1 %v1685_v10  ;;  %v1688_v11 = vsel %vm1370_vm3, %v1678_v9, -inf }
 0x1eb   : > { %1689 = vmax.xlane.f32.xlu1 %v1688_v11 }
 0x26c   : > { %v1681_v13 = vpop.xlane.xlu0 %1680 }
 0x26d   : > { %v1691_v14 = vsub.f32 %v1675_v60, %v1681_v13  ;;  %v3595_v13 = vld [vmem:[%s3372_s14] sm:$0xff] }
 0x26f   : > { %v1695_v15 = vmul.f32 1.442695, %v1691_v14 }
 0x270   : > { %v1684_v16 = vpop.xlane.xlu0 %1683 }
 0x271   : > { %3247 = vpow2.f32 %v1695_v15  ;;  %v1692_v17 = vsub.f32 %v1676_v0, %v1684_v16 }
 0x273   : > { %v1697_v18 = vmul.f32 1.442695, %v1692_v17 }
 0x274   : > { %v1687_v20 = vpop.xlane.xlu1 %1686 }
 0x275   : > { %3249 = vpow2.f32 %v1697_v18  ;;  %v1693_v21 = vsub.f32 %v1677_v6, %v1687_v20 }
 0x277   : > { %v1699_v22 = vmul.f32 1.442695, %v1693_v21 }
 0x278   : > { %v1690_v23 = vpop.xlane.xlu1 %1689 }
 0x279   : > { %3251 = vpow2.f32 %v1699_v22  ;;  %v1694_v24 = vsub.f32 %v1678_v9, %v1690_v23  ;;  %v2320_v9 = vsub.s32 0, %v3588_v2 }
 0x27b   : > { %v3248_v25 = vpop.eup %3247  ;;  %v1701_v26 = vmul.f32 1.442695, %v1694_v24  ;;  %v2321_v15 = vrot.slane %v3595_v13, %v2320_v9 }
 0x27c   : > { %v1703_v27 = vsel %vm1370_vm3, %v3248_v25, 0.0 }
 0x27d   : > { %3253 = vpow2.f32 %v1701_v26  ;;  %1704 = vadd.xlane.f32.xlu0 %v1703_v27 }
 0x27f   : > { %v3250_v28 = vpop.eup %3249 }
 0x280   : > { %v1706_v29 = vsel %vm1370_vm3, %v3250_v28, 0.0 }
 0x281   : > { %1707 = vadd.xlane.f32.xlu1 %v1706_v29  ;;  %v2349_v29 = vld [vmem:[%s3357_s19 + $0x8] sm:$0xff] }
 0x283   : > { %v3252_v30 = vpop.eup %3251 }
 0x284   : > { %v1709_v31 = vsel %vm1370_vm3, %v3252_v30, 0.0 }
 0x285   : > { %1710 = vadd.xlane.f32.xlu0 %v1709_v31  ;;  %v2350_v31 = vld [vmem:[%s3357_s19 + $0x10] sm:$0xff] }
 0x287   : > { %v3254_v32 = vpop.eup %3253 }
 0x288   : > { %v1712_v33 = vsel %vm1370_vm3, %v3254_v32, 0.0 }
 0x289   : > { %1713 = vadd.xlane.f32.xlu1 %v1712_v33 }
 0x30a   : > { %v1705_v34 = vpop.xlane.xlu0 %1704 }
 0x30b   : > { %3255 = vrcp.f32 %v1705_v34 }
 0x30e   : > { %v1708_v35 = vpop.xlane.xlu1 %1707 }
 0x30f   : > { %3257 = vrcp.f32 %v1708_v35 }
 0x312   : > { %v1711_v36 = vpop.xlane.xlu0 %1710 }
 0x313   : > { %3259 = vrcp.f32 %v1711_v36  ;;  %v2340_v36 = vsub.s32 1, %v3588_v2 }
 0x315   : > { %v3256_v38 = vpop.eup %3255 }
 0x316   : > { %v1719_v39 = vmul.f32 %v3256_v38, %v3248_v25  ;;  %v1714_v40 = vpop.xlane.xlu1 %1713  ;;  %v2341_v38 = vrot.slane %v3595_v13, %v2340_v36  ;;  %v2556_v36 = vld [vmem:[%s3668_s7 + $0x18] sm:$0xff] (!%p2792_p5) }
 0x317   : > { %3261 = vrcp.f32 %v1714_v40 }
 0x318   : > { %3057 = vmatmul.mubr.msk.f32.vlgmr.msra.gmra.mrb[18].mxu0 %vm1370_vm3, %v1719_v39 }
 0x319   : > { %v3258_v43 = vpop.eup %3257  ;;  %3065 = vmatpush3.msra.mxu0 %v1297_v41  ;;  %3066 = vmatprep.mubr.msk.f32.mxu0 %vm3282_vm1, %v3283_v12  ;;  %v2346_v41 = vrot.slane %v3595_v13, %v2345_v37  ;;  %v3286_v37 = vmov (!%p2792_p5), 0.0  }
 0x31a   : > { %v1720_v44 = vmul.f32 %v3258_v43, %v3250_v28  ;;  %3074 = vmatprep.subr.mxu0 %v3283_v12  ;;  %v2348_v28 = vld [vmem:[%s3357_s19] sm:$0xff] }
 0x31c   : > { %3062 = vmatmul.mubr.msk.f32.vlgmr.msra.gmra.mrb[14].mxu1 %vm1370_vm3, %v1720_v44  ;;  %v2438_v44 = vld [vmem:[%s3367_s26] sm:$0xff] }
 0x31d   : > { %v3260_v46 = vpop.eup %3259  ;;  %3070 = vmatpush3.msra.mxu1 %v1367_v45  ;;  %3071 = vmatprep.mubr.msk.f32.mxu1 %vm3282_vm1, %v3283_v12  ;;  %v2439_v45 = vld [vmem:[%s3367_s26 + $0x8] sm:$0xff] }
 0x31e   : > { %v1721_v47 = vmul.f32 %v3260_v46, %v3252_v30  ;;  %3079 = vmatprep.subr.mxu1 %v3283_v12  ;;  %v3208_v30 = vpack.c.bf16 %v2349_v29, %v2348_v28  ;;  %v3214_v46 = vpack.c.bf16 %v2439_v45, %v2438_v44 }
 0x320   : > { %3067 = vmatmul.mubr.msk.f32.vlgmr.msra.gmra.mrb[20].mxu0 %vm1370_vm3, %v1721_v47  ;;  %v2440_v47 = vld [vmem:[%s3367_s26 + $0x10] sm:$0xff] }
 0x321   : > { %v3262_v48 = vpop.eup %3261  ;;  %3076 = vmatprep.mubr.msk.f32.mxu0 %vm3282_vm1, %v3283_v12  ;;  %3075 = vmatpush3.msra.mxu0 %v2015_v50  ;;  %v2442_v50 = vld [vmem:[%s3367_s26 + $0x20] sm:$0xff] }
 0x322   : > { %v1722_v49 = vmul.f32 %v3262_v48, %v3254_v32  ;;  %3084 = vmatprep.subr.mxu0 %v3283_v12  ;;  %v2351_v32 = vld [vmem:[%s3357_s19 + $0x18] sm:$0xff] }
 0x323   : > { %v2441_v48 = vld [vmem:[%s3367_s26 + $0x18] sm:$0xff] }
 0x324   : > { %3072 = vmatmul.mubr.msk.f32.vlgmr.msra.gmra.mrb[16].mxu1 %vm1370_vm3, %v1722_v49  ;;  %v3217_v49 = vpack.c.bf16 %v2441_v48, %v2440_v47 }
 0x325   : > { %3081 = vmatprep.mubr.msk.f32.mxu1 %vm3282_vm1, %v3283_v12  ;;  %3080 = vmatpush3.msra.mxu1 %v2016_v51  ;;  %v2443_v51 = vld [vmem:[%s3367_s26 + $0x28] sm:$0xff] }
 0x326   : > { %3089 = vmatprep.subr.mxu1 %v3283_v12 }
 0x3eb   : > { %v1792_v53 = vpop.f32.mrb[18].mxu0 }
 0x3ec   : > { %v3058_v54 = vpop.f32.mrb[19].mxu0  ;;  %3077 = vmatmul.mubr.msk.f32.vlgmr.msra.gmra.mrb[22].mxu0 %vm1370_vm3, %v1792_v53  ;;  %v2444_v53 = vld [vmem:[%s3367_s26 + $0x30] sm:$0xff] }
 0x3ed   : > { %3085 = vmatpush3.msra.mxu0 %v2017_v52  ;;  %3086 = vmatprep.mubr.msk.f32.mxu0 %vm3282_vm1, %v3283_v12  ;;  %v3220_v52 = vpack.c.bf16 %v2443_v51, %v2442_v50  ;;  %v2445_v54 = vld [vmem:[%s3367_s26 + $0x38] sm:$0xff] }
 0x3ee   : > { %3207 = vmatprep.subr.bf16.mxu0 %v3281_v4 }
 0x3ef   : > { %v1865_v56 = vpop.f32.mrb[14].mxu1 }
 0x3f0   : > { %v3063_v57 = vpop.f32.mrb[15].mxu1  ;;  %3082 = vmatmul.mubr.msk.f32.vlgmr.msra.gmra.mrb[18].mxu1 %vm1370_vm3, %v1865_v56  ;;  %v2354_v56 = vsub.s32 3, %v3588_v2 }
 0x3f1   : > { %3090 = vmatpush3.msra.mxu1 %v2018_v55  ;;  %3091 = vmatprep.mubr.msk.f32.mxu1 %vm3282_vm1, %v3283_v12  ;;  %v3223_v55 = vpack.c.bf16 %v2445_v54, %v2444_v53 }
 0x3f2   : > { %3213 = vmatprep.subr.bf16.mxu1 %v3281_v4  ;;  %v2355_v57 = vrot.slane %v3595_v13, %v2354_v56 }
 0x3f3   : > { %v1938_v58 = vpop.f32.mrb[20].mxu0 }
 0x3f4   : > { %v3068_v59 = vpop.f32.mrb[21].mxu0  ;;  %3087 = vmatmul.mubr.msk.f32.vlgmr.msra.gmra.mrb[24].mxu0 %vm1370_vm3, %v1938_v58 }
 0x3f5   : > { %3102 = vmatprep.mubr.msk.f32.mxu0 %vm3282_vm1, %v3283_v12  ;;  %3209 = vmatpush3.bf16.msra.mxu0 %v3208_v30 }
 0x3f6   : > { %3210 = vmatprep.subr.bf16.mxu0 %v3281_v4 }
 0x3f7   : > { %v2011_v60 = vpop.f32.mrb[16].mxu1 }
 0x3f8   : > { %v3073_v61 = vpop.f32.mrb[17].mxu1  ;;  %3092 = vmatmul.mubr.msk.f32.vlgmr.msra.gmra.mrb[20].mxu1 %vm1370_vm3, %v2011_v60 }
 0x3f9   : > { %3121 = vmatprep.mubr.msk.f32.mxu1 %vm3282_vm1, %v3283_v12  ;;  %3215 = vmatpush3.bf16.msra.mxu1 %v3214_v46 }
 0x3fa   : > { %3216 = vmatprep.subr.bf16.mxu1 %v3281_v4 }
 0x3fd   : > { %3218 = vmatpush3.bf16.msra.mxu1 %v3217_v49 }
 0x3fe   : > { %3219 = vmatprep.subr.bf16.mxu1 %v3281_v4 }
 0x401   : > { %3221 = vmatpush3.bf16.msra.mxu1 %v3220_v52 }
 0x402   : > { %3222 = vmatprep.subr.bf16.mxu1 %v3281_v4  ;;  %v2448_v4 = vsub.s32 4, %v3588_v2 }
 0x405   : > { %3224 = vmatpush3.bf16.msra.mxu1 %v3223_v55 }
 0x4bf   : > { %v2088_v62 = vpop.f32.mrb[22].mxu0 }
 0x4c0   : > { %v3078_v0 = vpop.f32.mrb[23].mxu0  ;;  %v2311_v3 = vsel %vm526_vm2, %v2088_v62, 0.0 }
 0x4c3   : > { %v2161_v1 = vpop.f32.mrb[18].mxu1 }
 0x4c4   : > { %v2312_v5 = vsel %vm526_vm2, %v2161_v1, 0.0  ;;  %v3083_v6 = vpop.f32.mrb[19].mxu1 }
 0x4c5   : > { %v2313_v7 = vadd.f32 %v2312_v5, %v2311_v3 }
 0x4c7   : > { %v2234_v8 = vpop.f32.mrb[24].mxu0 }
 0x4c8   : > { %v2314_v10 = vsel %vm526_vm2, %v2234_v8, 0.0  ;;  %v3088_v11 = vpop.f32.mrb[25].mxu0  ;;  %v2449_v8 = vrot.slane %v3595_v13, %v2448_v4 }
 0x4c9   : > { %v2315_v12 = vadd.f32 %v2314_v10, %v2313_v7 }
 0x4cb   : > { %v2307_v14 = vpop.f32.mrb[20].mxu1 }
 0x4cc   : > { %v2316_v16 = vsel %vm526_vm2, %v2307_v14, 0.0  ;;  %v3093_v17 = vpop.f32.mrb[21].mxu1 }
 0x4cd   : > { %v2317_v18 = vadd.f32 %v2316_v16, %v2315_v12 }
 0x4cf   : > { %v2322_v20 = vadd.f32 %v2321_v15, %v2317_v18 }
 0x4d1   : > { %v2323_v21 = vadd.f32 %v2322_v20, %v3398_v19  ;;  %v3211_v19 = vpack.c.bf16 %v2351_v32, %v2350_v31 }
 0x4d3   : > { %v2324_v22 = vsel %vm526_vm2, %v2323_v21, 0.0  ;;  %3212 = vmatpush3.bf16.msra.mxu0 %v3211_v19  ;;  %v2553_v19 = vld [vmem:[%s3668_s7] sm:$0xff] (!%p2792_p5) }
 0x4d4   : > { %2325 = vadd.xlane.f32.xlu0 %v2324_v22 }
 0x561   : > { %v2326_v23 = vpop.xlane.xlu0 %2325 }
 0x562   : > { %v2328_v24 = vmul.f32 0.03125, %v2326_v23 }
 0x564   : > { %v2329_v25 = vsub.f32 %v2323_v21, %v2328_v24 }
 0x566   : > { %v2330_v26 = vmul.f32 %v2329_v25, %v2329_v25 }
 0x568   : > { %v2331_v27 = vsel %vm526_vm2, %v2330_v26, 0.0  ;;  %v2545_v26 = vsub.s32 6, %v3588_v2 }
 0x569   : > { %2332 = vadd.xlane.f32.xlu1 %v2331_v27 }
 0x56a   : > { %v2546_v29 = vrot.slane %v3595_v13, %v2545_v26 }
 0x5f6   : > { %v2333_v33 = vpop.xlane.xlu1 %2332 }
 0x5f7   : > { %v2334_v34 = vmul.f32 0.03125, %v2333_v33  ;;  %v2554_v33 = vld [vmem:[%s3668_s7 + $0x8] sm:$0xff] (!%p2792_p5) }
 0x5f9   : > { %v2335_v35 = vadd.f32 1e-12, %v2334_v34  ;;  %v3284_v34 = vmov (!%p2792_p5), 0.0|0.0  }
 0x5fa   : > { %3225 = vmatprep.subr.bf16.mxu0 (!%p2792_p5), %v3284_v34 }
 0x5fb   : > { %3263 = vrsqrt.f32 %v2335_v35  ;;  %v3226_v35 = vpack.c.bf16 (!%p2792_p5), %v2554_v33, %v2553_v19 }
 0x605   : > { %v3264_v39 = vpop.eup %3263 }
 0x606   : > { %v2337_v40 = vmul.f32 %v3264_v39, %v2329_v25  ;;  %v2540_v25 = vsub.s32 5, %v3588_v2  ;;  %v2557_v39 = vld [vmem:[%s3668_s7 + $0x20] sm:$0x1] (!%p2792_p5) }
 0x608   : > { %v2342_v42 = vmul.f32 %v2341_v38, %v2337_v40  ;;  %v2541_v27 = vrot.slane %v3595_v13, %v2540_v25  ;;  %v2555_v13 = vld [vmem:[%s3668_s7 + $0x10] sm:$0xff] (!%p2792_p5) }
 0x609   : > { %v3229_v38 = vpack.c.bf16 (!%p2792_p5), %v2556_v36, %v2555_v13 }
 0x60a   : > { %v2347_v43 = vadd.f32 %v2346_v41, %v2342_v42 }
 0x60c   : > { %3103 = vmatmul.mubr.msk.f32.vlgmr.msra.gmra.mrb[26].mxu0 %vm526_vm2, %v2347_v43 }
 0x60d   : > { %3132 = vmatprep.mubr.msk.f32.mxu0 (!%p2792_p5), %vm3285_vm5, %v3286_v37  ;;  %3227 = vmatpush3.bf16.msra.mxu0 (!%p2792_p5), %v3226_v35 }
 0x60e   : > { %3228 = vmatprep.subr.bf16.mxu0 (!%p2792_p5), %v3284_v34 }
 0x611   : > { %3230 = vmatpush3.bf16.msra.mxu0 (!%p2792_p5), %v3229_v38 }
 0x6df   : > { %v2425_v58 = vpop.f32.mrb[26].mxu0 }
 0x6e0   : > { %v2426_v59 = vadd.f32 %v2425_v58, %v2355_v57  ;;  %v3104_v60 = vpop.f32.mrb[27].mxu0 }
 0x6e2   : > { %v2430_v61 = vmul.f32 0.044715, %v2426_v59  ;;  %v2429_v5 = vmul.f32 0.5, %v2426_v59 }
 0x6e4   : > { %v2431_v62 = vmul.f32 %v2430_v61, %v2426_v59 }
 0x6e6   : > { %v2432_v63 = vmul.f32 %v2431_v62, %v2426_v59 }
 0x6e8   : > { %v2433_v0 = vadd.f32 %v2432_v63, %v2426_v59 }
 0x6ea   : > { %v2434_v1 = vmul.f32 0.7978846, %v2433_v0 }
 0x6ec   : > { %3265 = vtanh.f32 %v2434_v1 }
 0x6f6   : > { %v3266_v3 = vpop.eup %3265 }
 0x6f7   : > { %v2436_v6 = vadd.f32 1.0, %v3266_v3 }
 0x6f9   : > { %v2437_v7 = vmul.f32 %v2436_v6, %v2429_v5 }
 0x6fb   : > { %3122 = vmatmul.mubr.msk.f32.vlgmr.msra.gmra.mrb[22].mxu1 %vm2450_vm4, %v2437_v7 }
 0x7ce   : > { %v2520_v10 = vpop.f32.mrb[22].mxu1 }
 0x7cf   : > { %v2521_v11 = vadd.f32 %v2520_v10, %v2449_v8  ;;  %v3123_v12 = vpop.f32.mrb[23].mxu1 }
 0x7d1   : > { %v2524_v14 = vadd.f32 %v2521_v11, %v2347_v43 }
 0x7d3   : > { %v2525_v15 = vsel %vm526_vm2, %v2524_v14, 0.0 }
 0x7d4   : > { %2526 = vadd.xlane.f32.xlu0 %v2525_v15 }
 0x861   : > { %v2527_v16 = vpop.xlane.xlu0 %2526 }
 0x862   : > { %v2528_v17 = vmul.f32 0.03125, %v2527_v16 }
 0x864   : > { %v2529_v18 = vsub.f32 %v2524_v14, %v2528_v17 }
 0x866   : > { %v2530_v20 = vmul.f32 %v2529_v18, %v2529_v18 }
 0x868   : > { %v2531_v21 = vsel %vm526_vm2, %v2530_v20, 0.0 }
 0x869   : > { %2532 = vadd.xlane.f32.xlu1 %v2531_v21 }
 0x8f6   : > { %v2533_v22 = vpop.xlane.xlu1 %2532 }
 0x8f7   : > { %v2534_v23 = vmul.f32 0.03125, %v2533_v22 }
 0x8f9   : > { %v2535_v24 = vadd.f32 1e-12, %v2534_v23 }
 0x8fb   : > { %3267 = vrsqrt.f32 %v2535_v24 }
 0x905   : > { %v3268_v28 = vpop.eup %3267 }
 0x906   : > { %v2537_v30 = vmul.f32 %v3268_v28, %v2529_v18  ;;  %2552 = sbr.rel (%p2792_p5) target bundleno = 2849 (0xb21), region = 60 }
 0x908   : > { %v2542_v31 = vmul.f32 %v2541_v27, %v2537_v30 }
 0x90a   : > { %v2547_v32 = vadd.f32 %v2546_v29, %v2542_v31 }
 0x90c   : > { %2548 = vst.msk [vmem:[#allocation2] sm:$0xff] %vm526_vm2, %v2547_v32  ;;  %3133 = vmatmul.mubr.msk.f32.vlgmr.msra.gmra.mrb[0].mxu0 (!%p2792_p5), %vm526_vm2, %v2547_v32 }
 0x9df   : > { %v2627_v40 = vpop.f32.mrb[0].mxu0 }
 0x9e0   : > { %v2628_v41 = vadd.f32 %v2627_v40, %v2557_v39  ;;  %v3134_v42 = vpop.f32.mrb[1].mxu0 }
 0x9e2   : > { %v2632_v43 = vsel %vm2631_vm6, %v2628_v41, -inf }
 0x9e3   : > { %2633 = vmax.xlane.f32.xlu0 %v2632_v43 }
 0xa70   : > { %v2634_v44 = vpop.xlane.xlu0 %2633 }
 0xa71   : > { %v2635_v45 = vsub.f32 %v2628_v41, %v2634_v44 }
 0xa73   : > { %v2636_v46 = vmul.f32 1.442695, %v2635_v45 }
 0xa75   : > { %3269 = vpow2.f32 %v2636_v46 }
 0xa7f   : > { %v3270_v47 = vpop.eup %3269 }
 0xa80   : > { %v2638_v48 = vsel %vm2631_vm6, %v3270_v47, 0.0 }
 0xa81   : > { %2639 = vadd.xlane.f32.xlu0 %v2638_v48 }
 0xb0e   : > { %v2640_v49 = vpop.xlane.xlu0 %2639 }
 0xb0f   : > { %3271 = vlog2.f32 %v2640_v49 }
 0xb19   : > { %v3272_v50 = vpop.eup %3271 }
 0xb1a   : > { %v2642_v51 = vmul.f32 0.6931472, %v3272_v50 }
 0xb1c   : > { %v2643_v52 = vsub.f32 %v2635_v45, %v2642_v51 }
 0xb1e   : > { %v2647_v53 = vrot.slane %v2643_v52, %v2320_v9 }
 0xb20   : > { %2648 = vst [vmem:[%s3669_s8] sm:$0xff] %v2647_v53 }
 0xb21 PF: > { %s18_s27 = sadd.s32 1, %s3279_s27  }
 0xb22   : > { %p15_p6 = scmp.ge.s32.totalorder %s18_s27, 4  }
 0xb24   :  { %17 = sbr.rel (!%p15_p6) target bundleno = 1 (0x1), region = 101 }

</bundles_post_ra>
